<compile_context>
chip_gen: v7x
topology: tpu7x:2x2x1
jax: 0.10.0
libtpu: 0.0.40
codegen_flags: <defaults>
</compile_context>

<pallas_src>
import numpy as np
import jax
import jax.numpy as jnp
from jax import lax
from jax.experimental import pallas as pl
from jax.experimental.pallas import tpu as pltpu


# ------------------------------ Pallas kernel -------------------------------

def attention_kernel(x_ref, pw_ref, pb_ref, ow_ref, ob_ref, out_ref):
    """Fused AttentionBlock forward for one sample, NCHW-native (C, HW) layout.

    x_ref : (C, HW)  f32   one sample, channels on the sublane axis (NCHW)
    pw_ref: (3C, C)  bf16  qkv projection weight, (out, in) layout; Q rows
                           pre-scaled by d_k**-0.5
    pb_ref: (3C, 1)  f32   qkv bias (Q slice pre-scaled)
    ow_ref: (C, C)   bf16  output projection weight, (out, in) layout
    ob_ref: (C, 1)   f32
    out_ref:(C, HW)  f32
    """
    c = ow_ref.shape[0]
    xb = x_ref[...].astype(jnp.bfloat16)                     # (C, HW) bf16 for MXU

    # qkv^T = W_p @ x  -> (3C, HW); add bias then cast to bf16 immediately so
    # the f32 accumulator dies before the score/softmax region.
    qkv_t = (lax.dot_general(pw_ref[...], xb, (((1,), (0,)), ((), ())),
                             preferred_element_type=jnp.float32)
             + pb_ref[...]).astype(jnp.bfloat16)
    q_t = qkv_t[:c]                                          # (C, HW)
    k_t = qkv_t[c:2 * c]                                     # (C, HW)
    v_t = qkv_t[2 * c:]                                      # (C, HW)

    # scores[i, j] = sum_d q[i, d] * k[j, d]; the 1/sqrt(d_k) scale is already
    # folded into the Q rows of the projection weight.
    s = lax.dot_general(q_t, k_t, (((0,), (0,)), ((), ())),
                        preferred_element_type=jnp.float32)  # (HW, HW)

    # Softmax over keys (last axis) in f32; reciprocal runs on the EUP slot.
    s_max = jnp.max(s, axis=-1, keepdims=True)
    e = jnp.exp(s - s_max)
    p = (e * pl.reciprocal(jnp.sum(e, axis=-1, keepdims=True), approx=True)
         ).astype(jnp.bfloat16)                              # (HW, HW) bf16

    # res^T[d, i] = sum_j v^T[d, j] * p[i, j]  -> (C, HW)
    res_t = lax.dot_general(v_t, p, (((1,), (1,)), ((), ())),
                            preferred_element_type=jnp.float32)

    # out^T = W_o @ res + b_o; residual is reloaded from VMEM (not kept live).
    out_t = lax.dot_general(ow_ref[...], res_t.astype(jnp.bfloat16),
                            (((1,), (0,)), ((), ())),
                            preferred_element_type=jnp.float32)
    out_ref[...] = out_t + ob_ref[...] + x_ref[...]


# ------------------------------ host wrapper --------------------------------

def attention_block_forward(x_nchw, kparams, t=None):
    """AttentionBlock.forward.  x: (B, C, H, W) NCHW, returns NCHW."""
    _ = t                                  # the reference forward ignores t
    B, C, H, W = x_nchw.shape
    HW = H * W

    # NCHW -> (B, C, HW) is a contiguous (free) reshape; no transpose here.
    x3d = x_nchw.reshape(B, C, HW)

    pw = kparams['proj_w_t']               # (3C, C)  bf16, Q rows pre-scaled
    pb = kparams['proj_b']                 # (3C, 1)  f32
    ow = kparams['out_w_t']                # (C, C)   bf16
    ob = kparams['out_b']                  # (C, 1)   f32

    flops = B * (2 * HW * C * (3 * C) + 2 * (2 * HW * HW * C) + 2 * HW * C * C)
    bytes_accessed = (4 * (2 * B * C * HW)             # x in + out, f32
                      + 2 * (pw.size + ow.size)        # bf16 weights
                      + 4 * (pb.size + ob.size))       # f32 biases
    cost = pl.CostEstimate(flops=flops, transcendentals=B * HW * HW,
                           bytes_accessed=int(bytes_accessed))

    out3d = pl.pallas_call(
        attention_kernel,
        out_shape=jax.ShapeDtypeStruct((B, C, HW), jnp.float32),
        grid=(B,),
        in_specs=[pl.BlockSpec((None, C, HW), lambda b: (b, 0, 0)),
                  pl.BlockSpec((3 * C, C), lambda b: (0, 0)),
                  pl.BlockSpec((3 * C, 1), lambda b: (0, 0)),
                  pl.BlockSpec((C, C), lambda b: (0, 0)),
                  pl.BlockSpec((C, 1), lambda b: (0, 0))],
        out_specs=pl.BlockSpec((None, C, HW), lambda b: (b, 0, 0)),
        compiler_params=pltpu.CompilerParams(dimension_semantics=("parallel",)),
        cost_estimate=cost,
    )(x3d, pw, pb, ow, ob)

    # (B, C, HW) -> NCHW is again a free contiguous reshape.
    return out3d.reshape(B, C, H, W)


# --------------------------- parameters (synthetic) --------------------------

def init_params(key, n_channels):
    """Math-layout f32 parameters (used by the pure-JAX reference)."""
    C = n_channels
    s = 0.1
    ks = jax.random.split(key, 4)
    return {
        'proj_w': s * jax.random.normal(ks[0], (C, 3 * C), jnp.float32),  # x @ W
        'proj_b': s * jax.random.normal(ks[1], (3 * C,), jnp.float32),
        'out_w': s * jax.random.normal(ks[2], (C, C), jnp.float32),
        'out_b': s * jax.random.normal(ks[3], (C,), jnp.float32),
    }


def prepare_params(params, n_channels):
    """One-time prep: transpose to (out, in), fold the 1/sqrt(d_k) scale into
    the Q slice, and cast weights to bf16 (biases stay f32, shaped (., 1))."""
    C = n_channels
    scale = float(C) ** -0.5               # d_k = n_channels (module default)

    pw_t = jnp.transpose(params['proj_w'])                 # (3C, C)
    pb = params['proj_b']                                  # (3C,)
    pw_t = pw_t.at[:C].multiply(scale)
    pb = pb.at[:C].multiply(scale)

    return {
        'proj_w_t': pw_t.astype(jnp.bfloat16),             # (3C, C) bf16
        'proj_b': pb.reshape(3 * C, 1).astype(jnp.float32),
        'out_w_t': jnp.transpose(params['out_w']).astype(jnp.bfloat16),  # (C, C)
        'out_b': params['out_b'].reshape(C, 1).astype(jnp.float32),
    }


# -------------------------- pure-JAX reference check -------------------------

def ref_forward(x_nchw, p):
    B, C, H, W = x_nchw.shape
    scale = float(C) ** -0.5
    xs = jnp.transpose(x_nchw.reshape(B, C, H * W), (0, 2, 1))        # (B, HW, C)
    qkv = xs @ p['proj_w'] + p['proj_b']
    q, k, v = qkv[..., :C], qkv[..., C:2 * C], qkv[..., 2 * C:]
    attn = jnp.einsum('bid,bjd->bij', q, k) * scale
    attn = jax.nn.softmax(attn, axis=-1)
    res = jnp.einsum('bij,bjd->bid', attn, v)
    res = res @ p['out_w'] + p['out_b'] + xs
    return jnp.transpose(res, (0, 2, 1)).reshape(B, C, H, W)


# ------------------------------------ main -----------------------------------

if __name__ == "__main__":
    key = jax.random.PRNGKey(0)
    B, C, H, W = 2, 128, 8, 8              # n_heads=1, d_k=C (module defaults)

    k1, k2 = jax.random.split(key)
    x = jax.random.normal(k1, (B, C, H, W), jnp.float32)
    params = init_params(k2, C)
    kparams = prepare_params(params, C)    # pre-cast / pre-scaled, done once

    out = attention_block_forward(x, kparams)
    out = jax.block_until_ready(out)

    ref = ref_forward(x, params)
    # bf16 MXU inputs (f32 accumulation) + approx reciprocal -> wider tolerance.
    np.testing.assert_allclose(np.asarray(out), np.asarray(ref),
                               rtol=3e-2, atol=3e-2)
    print("KERNEL_OK")
</pallas_src>

<mosaic_0001>
module attributes {stable_mosaic.version = 11 : i64} {
  func.func @attention_kernel(%arg0: i32, %arg1: memref<1x128x64xf32, #tpu.memory_space<vmem>>, %arg2: memref<384x128xbf16, #tpu.memory_space<vmem>>, %arg3: memref<384x1xf32, #tpu.memory_space<vmem>>, %arg4: memref<128x128xbf16, #tpu.memory_space<vmem>>, %arg5: memref<128x1xf32, #tpu.memory_space<vmem>>, %arg6: memref<1x128x64xf32, #tpu.memory_space<vmem>>) attributes {dimension_semantics = [#tpu.dimension_semantics<parallel>], iteration_bounds = array<i64: 2>, scalar_prefetch = 0 : i64, scratch_operands = 0 : i64, tpu.core_type = #tpu.core_type<tc>, window_params = [{transform_indices = @transform_0, window_bounds = array<i64: 1, 128, 64>}, {pipeline_mode = #tpu.pipeline_mode<synchronous>, transform_indices = @transform_1, window_bounds = array<i64: 384, 128>}, {pipeline_mode = #tpu.pipeline_mode<synchronous>, transform_indices = @transform_2, window_bounds = array<i64: 384, 1>}, {pipeline_mode = #tpu.pipeline_mode<synchronous>, transform_indices = @transform_3, window_bounds = array<i64: 128, 128>}, {pipeline_mode = #tpu.pipeline_mode<synchronous>, transform_indices = @transform_4, window_bounds = array<i64: 128, 1>}, {transform_indices = @transform_5, window_bounds = array<i64: 1, 128, 64>}]} {
    %c0 = arith.constant 0 : index
    %c0_0 = arith.constant 0 : index
    %c0_1 = arith.constant 0 : index
    %0 = vector.load %arg1[%c0, %c0_0, %c0_1] : memref<1x128x64xf32, #tpu.memory_space<vmem>>, vector<1x128x64xf32>
    %1 = vector.shape_cast %0 : vector<1x128x64xf32> to vector<128x64xf32>
    %2 = arith.truncf %1 : vector<128x64xf32> to vector<128x64xbf16>
    %c0_2 = arith.constant 0 : index
    %c0_3 = arith.constant 0 : index
    %3 = vector.load %arg2[%c0_2, %c0_3] : memref<384x128xbf16, #tpu.memory_space<vmem>>, vector<384x128xbf16>
    %cst = arith.constant dense<0.000000e+00> : vector<384x64xf32>
    %4 = tpu.matmul %3, %2, %cst {dimension_numbers = #tpu.dot_dimension_numbers<[1], [0], [0], [1], [0, 0, 1, 1], [], []>} : vector<384x128xbf16>, vector<128x64xbf16>, vector<384x64xf32> -> vector<384x64xf32>
    %c0_4 = arith.constant 0 : index
    %c0_5 = arith.constant 0 : index
    %5 = vector.load %arg3[%c0_4, %c0_5] : memref<384x1xf32, #tpu.memory_space<vmem>>, vector<384x1xf32>
    %6 = vector.broadcast %5 : vector<384x1xf32> to vector<384x64xf32>
    %7 = arith.addf %4, %6 : vector<384x64xf32>
    %8 = arith.truncf %7 : vector<384x64xf32> to vector<384x64xbf16>
    %9 = vector.extract_strided_slice %8 {offsets = [0, 0], sizes = [128, 64], strides = [1, 1]} : vector<384x64xbf16> to vector<128x64xbf16>
    %10 = vector.extract_strided_slice %8 {offsets = [128, 0], sizes = [128, 64], strides = [1, 1]} : vector<384x64xbf16> to vector<128x64xbf16>
    %11 = vector.extract_strided_slice %8 {offsets = [256, 0], sizes = [128, 64], strides = [1, 1]} : vector<384x64xbf16> to vector<128x64xbf16>
    %cst_6 = arith.constant dense<0.000000e+00> : vector<64x64xf32>
    %12 = tpu.matmul %9, %10, %cst_6 {dimension_numbers = #tpu.dot_dimension_numbers<[0], [0], [1], [1], [0, 1, 1, 1], [], []>} : vector<128x64xbf16>, vector<128x64xbf16>, vector<64x64xf32> -> vector<64x64xf32>
    %cst_7 = arith.constant dense<0xFF800000> : vector<64xf32>
    %13 = vector.multi_reduction <maximumf>, %12, %cst_7 [1] : vector<64x64xf32> to vector<64xf32>
    %14 = vector.shape_cast %13 : vector<64xf32> to vector<64x1xf32>
    %15 = vector.broadcast %14 : vector<64x1xf32> to vector<64x64xf32>
    %16 = arith.subf %12, %15 : vector<64x64xf32>
    %17 = math.exp %16 : vector<64x64xf32>
    %cst_8 = arith.constant dense<0.000000e+00> : vector<64xf32>
    %18 = vector.multi_reduction <add>, %17, %cst_8 [1] : vector<64x64xf32> to vector<64xf32>
    %19 = vector.shape_cast %18 : vector<64xf32> to vector<64x1xf32>
    %20 = tpu.reciprocal %19 {approx = true} : vector<64x1xf32> -> vector<64x1xf32>
    %21 = vector.broadcast %20 : vector<64x1xf32> to vector<64x64xf32>
    %22 = arith.mulf %17, %21 : vector<64x64xf32>
    %23 = arith.truncf %22 : vector<64x64xf32> to vector<64x64xbf16>
    %cst_9 = arith.constant dense<0.000000e+00> : vector<128x64xf32>
    %24 = tpu.matmul %11, %23, %cst_9 {dimension_numbers = #tpu.dot_dimension_numbers<[1], [1], [0], [0], [0, 0, 1, 0], [], []>} : vector<128x64xbf16>, vector<64x64xbf16>, vector<128x64xf32> -> vector<128x64xf32>
    %c0_10 = arith.constant 0 : index
    %c0_11 = arith.constant 0 : index
    %25 = vector.load %arg4[%c0_10, %c0_11] : memref<128x128xbf16, #tpu.memory_space<vmem>>, vector<128x128xbf16>
    %26 = arith.truncf %24 : vector<128x64xf32> to vector<128x64xbf16>
    %cst_12 = arith.constant dense<0.000000e+00> : vector<128x64xf32>
    %27 = tpu.matmul %25, %26, %cst_12 {dimension_numbers = #tpu.dot_dimension_numbers<[1], [0], [0], [1], [0, 0, 1, 1], [], []>} : vector<128x128xbf16>, vector<128x64xbf16>, vector<128x64xf32> -> vector<128x64xf32>
    %c0_13 = arith.constant 0 : index
    %c0_14 = arith.constant 0 : index
    %28 = vector.load %arg5[%c0_13, %c0_14] : memref<128x1xf32, #tpu.memory_space<vmem>>, vector<128x1xf32>
    %29 = vector.broadcast %28 : vector<128x1xf32> to vector<128x64xf32>
    %30 = arith.addf %27, %29 : vector<128x64xf32>
    %c0_15 = arith.constant 0 : index
    %c0_16 = arith.constant 0 : index
    %c0_17 = arith.constant 0 : index
    %31 = vector.load %arg1[%c0_15, %c0_16, %c0_17] : memref<1x128x64xf32, #tpu.memory_space<vmem>>, vector<1x128x64xf32>
    %32 = vector.shape_cast %31 : vector<1x128x64xf32> to vector<128x64xf32>
    %33 = arith.addf %30, %32 : vector<128x64xf32>
    %c0_18 = arith.constant 0 : index
    %c0_19 = arith.constant 0 : index
    %c0_20 = arith.constant 0 : index
    %34 = vector.load %arg6[%c0_18, %c0_19, %c0_20] : memref<1x128x64xf32, #tpu.memory_space<vmem>>, vector<1x128x64xf32>
    %35 = vector.shape_cast %34 : vector<1x128x64xf32> to vector<128x64xf32>
    %36 = vector.shape_cast %33 : vector<128x64xf32> to vector<1x128x64xf32>
    tpu.vector_store %arg6[%c0_18, %c0_19, %c0_20], %36 {strides = array<i32>} : memref<1x128x64xf32, #tpu.memory_space<vmem>>, vector<1x128x64xf32>,
    return
  }
  func.func @transform_0(%arg0: i32) -> (i32, i32, i32) {
    %c0_i32 = arith.constant 0 : i32
    %c0_i32_0 = arith.constant 0 : i32
    %c0_i32_1 = arith.constant 0 : i32
    return %arg0, %c0_i32, %c0_i32_0 : i32, i32, i32
  }
  func.func @transform_1(%arg0: i32) -> (i32, i32) {
    %c0_i32 = arith.constant 0 : i32
    %c0_i32_0 = arith.constant 0 : i32
    %c0_i32_1 = arith.constant 0 : i32
    return %c0_i32, %c0_i32_0 : i32, i32
  }
  func.func @transform_2(%arg0: i32) -> (i32, i32) {
    %c0_i32 = arith.constant 0 : i32
    %c0_i32_0 = arith.constant 0 : i32
    %c0_i32_1 = arith.constant 0 : i32
    return %c0_i32, %c0_i32_0 : i32, i32
  }
  func.func @transform_3(%arg0: i32) -> (i32, i32) {
    %c0_i32 = arith.constant 0 : i32
    %c0_i32_0 = arith.constant 0 : i32
    %c0_i32_1 = arith.constant 0 : i32
    return %c0_i32, %c0_i32_0 : i32, i32
  }
  func.func @transform_4(%arg0: i32) -> (i32, i32) {
    %c0_i32 = arith.constant 0 : i32
    %c0_i32_0 = arith.constant 0 : i32
    %c0_i32_1 = arith.constant 0 : i32
    return %c0_i32, %c0_i32_0 : i32, i32
  }
  func.func @transform_5(%arg0: i32) -> (i32, i32, i32) {
    %c0_i32 = arith.constant 0 : i32
    %c0_i32_0 = arith.constant 0 : i32
    %c0_i32_1 = arith.constant 0 : i32
    return %arg0, %c0_i32, %c0_i32_0 : i32, i32, i32
  }
}

</mosaic_0001>

<bundles_post_ra>
// kernel: tpu_custom_call.1
= control target key start
LH: loop header
LB: loop body
LE: loop exit
PB: predicated region body
PF: predicated region fallthrough
CT: control target
= control target key end

     0   :  { %s2041_s18 = smov 0   ;;  %s2533_s0 = inlined_call_operand.vmem [shape: f32[2,128,64], index: 0, kind: input, shape index: {}]   ;;  %s2534_s1 = inlined_call_operand.vmem [shape: bf16[384,128], index: 1, kind: input, shape index: {}]   ;;  %s2535_s2 = inlined_call_operand.vmem [shape: f32[384,1], index: 2, kind: input, shape index: {}]   ;;  %s2536_s3 = inlined_call_operand.vmem [shape: bf16[128,128], index: 3, kind: input, shape index: {}]   ;;  %s2537_s4 = inlined_call_operand.vmem [shape: f32[128,1], index: 4, kind: input, shape index: {}]   ;;  %s2538_s5 = inlined_call_operand.vmem [shape: f32[2,128,64], index: 5, kind: output, shape index: {}]  }
   0x1 LB: > { %s1638_s19 = sadd.s32 4294967295, %s2008_s18   ;;  %p1642_p0 = scmp.ge.s32.totalorder %s2008_s18, 1  ;;  %s2008_s18 = sphi %s2041_s18, %s15_s18  }
   0x2   : > { %p187_p1 = scmp.lt.s32.totalorder %s2008_s18, 3 }
   0x4   : > { %p188_p2 = pnand %p1642_p0, %p187_p1 }
   0x5   : > { %p215_p3 = scmp.lt.s32.totalorder (!%p188_p2), %s1638_s19, 1  ;;  %v1922_v0 = vld [vmem:[%s2534_s1] sm:$0xff] (!%p188_p2)   ;;  %v2010_v1 = vmov (!%p188_p2), 0   ;;  %v300_v14 = vld [vmem:[%s2535_s2 + $0x10] sm:$0xff] (!%p188_p2)  ;;  %v299_v16 = vld [vmem:[%s2535_s2 + $0x8] sm:$0xff] (!%p188_p2)  ;;  %vm1060_vm0 = vcmask (!%p188_p2), 523264  }
   0x6   : > { %191 = sbr.rel (%p188_p2) target bundleno = 1447 (0x5a7), region = 40  ;;  %1779 = vmatprep.mubr.bf16.mxu0 (!%p188_p2), %v1922_v0  ;;  %1920 = vset.pattern.permute.xlu0 (!%p188_p2), %v2010_v1  ;;  %v298_v12 = vld [vmem:[%s2535_s2] sm:$0xff] (!%p188_p2)  ;;  %v301_v18 = vld [vmem:[%s2535_s2 + $0x18] sm:$0xff] (!%p188_p2)  ;;  %v303_v22 = vld [vmem:[%s2535_s2 + $0x28] sm:$0xff] (!%p188_p2) }
   0x7   : > { %1921 = vset.pattern.permute.xlu1 (!%p188_p2), %v2010_v1  ;;  %348 = vperm.xlu0 (!%p188_p2), %1920, %v298_v12   ;;  %v302_v20 = vld [vmem:[%s2535_s2 + $0x20] sm:$0xff] (!%p188_p2)  ;;  %v304_v25 = vld [vmem:[%s2535_s2 + $0x30] sm:$0xff] (!%p188_p2)  ;;  %v305_v27 = vld [vmem:[%s2535_s2 + $0x38] sm:$0xff] (!%p188_p2) }
   0x8   : > { %358 = vperm.xlu1 (!%p188_p2), %1921, %v300_v14   ;;  %v306_v30 = vld [vmem:[%s2535_s2 + $0x40] sm:$0xff] (!%p188_p2)  ;;  %v307_v32 = vld [vmem:[%s2535_s2 + $0x48] sm:$0xff] (!%p188_p2)  ;;  %v308_v35 = vld [vmem:[%s2535_s2 + $0x50] sm:$0xff] (!%p188_p2) }
   0x9   : > { %v309_v37 = vld [vmem:[%s2535_s2 + $0x58] sm:$0xff] (!%p188_p2)  ;;  %v310_v38 = vld [vmem:[%s2535_s2 + $0x60] sm:$0xff] (!%p188_p2)  ;;  %v311_v39 = vld [vmem:[%s2535_s2 + $0x68] sm:$0xff] (!%p188_p2) }
   0xa   : > { %v1923_v40 = vld [vmem:[%s2534_s1 + $0x8] sm:$0xff] (!%p188_p2)   ;;  %v312_v41 = vld [vmem:[%s2535_s2 + $0x70] sm:$0xff] (!%p188_p2)  ;;  %v313_v43 = vld [vmem:[%s2535_s2 + $0x78] sm:$0xff] (!%p188_p2) }
   0xb   : > { %353 = vperm.xlu0 (!%p188_p2), %1920, %v299_v16   ;;  %v1924_v42 = vld [vmem:[%s2534_s1 + $0x10] sm:$0xff] (!%p188_p2)   ;;  %v314_v44 = vld [vmem:[%s2535_s2 + $0x80] sm:$0xff] (!%p188_p2)  ;;  %v315_v45 = vld [vmem:[%s2535_s2 + $0x88] sm:$0xff] (!%p188_p2) }
   0xc   : > { %363 = vperm.xlu1 (!%p188_p2), %1921, %v301_v18   ;;  %v1925_v46 = vld [vmem:[%s2534_s1 + $0x18] sm:$0xff] (!%p188_p2)   ;;  %v316_v47 = vld [vmem:[%s2535_s2 + $0x90] sm:$0xff] (!%p188_p2)  ;;  %v1926_v48 = vld [vmem:[%s2534_s1 + $0x20] sm:$0xff] (!%p188_p2)  }
   0xd   : > { %s2540_s19 = smov (!%p215_p3, %s1638_s19), 1  ;;  %v317_v49 = vld [vmem:[%s2535_s2 + $0x98] sm:$0xff]  ;;  %v318_v50 = vld [vmem:[%s2535_s2 + $0xa0] sm:$0xff]  ;;  %v319_v51 = vld [vmem:[%s2535_s2 + $0xa8] sm:$0xff] }
   0xe   : > { %s1689_s22 = sshll.u32 %s2540_s19, 7  ;;  %v1927_v52 = vld [vmem:[%s2534_s1 + $0x28] sm:$0xff]   ;;  %v320_v53 = vld [vmem:[%s2535_s2 + $0xb0] sm:$0xff]  ;;  %v321_v55 = vld [vmem:[%s2535_s2 + $0xb8] sm:$0xff] }
   0xf   : > { %s2060_s25 = scalar_lea.vmem %s2533_s0, %s1689_s22  ;;  %368 = vperm.xlu0 %1920, %v302_v20   ;;  %v1928_v54 = vld [vmem:[%s2534_s1 + $0x30] sm:$0xff]   ;;  %v322_v56 = vld [vmem:[%s2535_s2 + $0xc0] sm:$0xff]  ;;  %v323_v57 = vld [vmem:[%s2535_s2 + $0xc8] sm:$0xff]  ;;  %s2480_s29 = scalar_lea.vmem %s2538_s5, %s1689_s22 }
  0x10   : > { %v226_v2 = vld [vmem:[%s2060_s25] sm:$0xff]  ;;  %v227_v3 = vld [vmem:[%s2060_s25 + $0x8] sm:$0xff]  ;;  %v228_v4 = vld [vmem:[%s2060_s25 + $0x10] sm:$0xff]  ;;  %373 = vperm.xlu1 %1921, %v303_v22  }
  0x11   : > { %v242_v5 = vpack.c.bf16 %v227_v3, %v226_v2  ;;  %v229_v6 = vld [vmem:[%s2060_s25 + $0x18] sm:$0xff]  ;;  %v230_v8 = vld [vmem:[%s2060_s25 + $0x20] sm:$0xff]  ;;  %v231_v9 = vld [vmem:[%s2060_s25 + $0x28] sm:$0xff] }
  0x12   : > { %v243_v7 = vpack.c.bf16 %v229_v6, %v228_v4  ;;  %v244_v10 = vpack.c.bf16 %v231_v9, %v230_v8  ;;  %v232_v11 = vld [vmem:[%s2060_s25 + $0x30] sm:$0xff]  ;;  %v233_v13 = vld [vmem:[%s2060_s25 + $0x38] sm:$0xff]  ;;  %v234_v15 = vld [vmem:[%s2060_s25 + $0x40] sm:$0xff] }
  0x13   : > { %1763 = vmatprep.subr.bf16.mxu0 %v242_v5  ;;  %v245_v17 = vpack.c.bf16 %v233_v13, %v232_v11  ;;  %v235_v19 = vld [vmem:[%s2060_s25 + $0x48] sm:$0xff]  ;;  %v236_v23 = vld [vmem:[%s2060_s25 + $0x50] sm:$0xff]  ;;  %v237_v24 = vld [vmem:[%s2060_s25 + $0x58] sm:$0xff]  ;;  %378 = vperm.xlu0 %1920, %v304_v25  }
  0x14   : > { %1764 = vmatpush3.bf16.msra.mxu0 %v242_v5  ;;  %v246_v21 = vpack.c.bf16 %v235_v19, %v234_v15  ;;  %v247_v26 = vpack.c.bf16 %v237_v24, %v236_v23  ;;  %v238_v28 = vld [vmem:[%s2060_s25 + $0x60] sm:$0xff]  ;;  %v239_v29 = vld [vmem:[%s2060_s25 + $0x68] sm:$0xff]  ;;  %383 = vperm.xlu1 %1921, %v305_v27   ;;  %v240_v33 = vld [vmem:[%s2060_s25 + $0x70] sm:$0xff] }
  0x15   : > { %1765 = vmatprep.subr.bf16.mxu0 %v243_v7  ;;  %v248_v31 = vpack.c.bf16 %v239_v29, %v238_v28  ;;  %v241_v34 = vld [vmem:[%s2060_s25 + $0x78] sm:$0xff]  ;;  %v324_v59 = vld [vmem:[%s2535_s2 + $0xd0] sm:$0xff]  ;;  %v1930_v60 = vld [vmem:[%s2534_s1 + $0x40] sm:$0xff]  }
  0x16   : > { %v249_v36 = vpack.c.bf16 %v241_v34, %v240_v33  ;;  %v1929_v58 = vld [vmem:[%s2534_s1 + $0x38] sm:$0xff]   ;;  %v326_v62 = vld [vmem:[%s2535_s2 + $0xe0] sm:$0xff]  ;;  %v327_v63 = vld [vmem:[%s2535_s2 + $0xe8] sm:$0xff] }
  0x17   : > { %388 = vperm.xlu0 %1920, %v306_v30   ;;  %v325_v61 = vld [vmem:[%s2535_s2 + $0xd8] sm:$0xff]  ;;  %v1931_v0 = vld [vmem:[%s2534_s1 + $0x48] sm:$0xff]   ;;  %v328_v1 = vld [vmem:[%s2535_s2 + $0xf0] sm:$0xff] }
  0x18   : > { %1766 = vmatpush3.bf16.msra.mxu0 %v243_v7  ;;  %393 = vperm.xlu1 %1921, %v307_v32   ;;  %v1932_v2 = vld [vmem:[%s2534_s1 + $0x50] sm:$0xff]   ;;  %v329_v3 = vld [vmem:[%s2535_s2 + $0xf8] sm:$0xff]  ;;  %v1934_v5 = vld [vmem:[%s2534_s1 + $0x60] sm:$0xff]  }
  0x19   : > { %1767 = vmatprep.subr.bf16.mxu0 %v244_v10  ;;  %v1933_v4 = vld [vmem:[%s2534_s1 + $0x58] sm:$0xff]   ;;  %v1935_v6 = vld [vmem:[%s2534_s1 + $0x68] sm:$0xff]   ;;  %v1936_v7 = vld [vmem:[%s2534_s1 + $0x70] sm:$0xff]  }
  0x1a   : > { %v1937_v8 = vld [vmem:[%s2534_s1 + $0x78] sm:$0xff]  }
  0x1b   : > { %398 = vperm.xlu0 %1920, %v308_v35  }
  0x1c   : > { %1768 = vmatpush3.bf16.msra.mxu0 %v244_v10  ;;  %403 = vperm.xlu1 %1921, %v309_v37  }
  0x1d   : > { %1769 = vmatprep.subr.bf16.mxu0 %v245_v17 }
  0x1f   : > { %408 = vperm.xlu0 %1920, %v310_v38  }
  0x20   : > { %1770 = vmatpush3.bf16.msra.mxu0 %v245_v17  ;;  %413 = vperm.xlu1 %1921, %v311_v39  }
  0x21   : > { %1771 = vmatprep.subr.bf16.mxu0 %v246_v21 }
  0x23   : > { %418 = vperm.xlu0 %1920, %v312_v41  }
  0x24   : > { %1772 = vmatpush3.bf16.msra.mxu0 %v246_v21  ;;  %423 = vperm.xlu1 %1921, %v313_v43  }
  0x25   : > { %1773 = vmatprep.subr.bf16.mxu0 %v247_v26 }
  0x27   : > { %428 = vperm.xlu0 %1920, %v314_v44  }
  0x28   : > { %1774 = vmatpush3.bf16.msra.mxu0 %v247_v26  ;;  %433 = vperm.xlu1 %1921, %v315_v45  }
  0x29   : > { %1775 = vmatprep.subr.bf16.mxu0 %v248_v31 }
  0x2b   : > { %438 = vperm.xlu0 %1920, %v316_v47  }
  0x2c   : > { %1776 = vmatpush3.bf16.msra.mxu0 %v248_v31  ;;  %443 = vperm.xlu1 %1921, %v317_v49  }
  0x2d   : > { %1777 = vmatprep.subr.bf16.mxu0 %v249_v36 }
  0x2f   : > { %448 = vperm.xlu0 %1920, %v318_v50  }
  0x30   : > { %1778 = vmatpush3.bf16.msra.mxu0 %v249_v36  ;;  %453 = vperm.xlu1 %1921, %v319_v51  }
  0x33   : > { %1780 = vmatmul.mubr.bf16.vlgmr.msra.gmra.mrb[0].mxu0 %v1923_v40  ;;  %458 = vperm.xlu0 %1920, %v320_v53  }
  0x34   : > { %1783 = vmatprep.mubr.bf16.mxu0 %v1924_v42  ;;  %463 = vperm.xlu1 %1921, %v321_v55  }
  0x37   : > { %468 = vperm.xlu0 %1920, %v322_v56  }
  0x38   : > { %473 = vperm.xlu1 %1921, %v323_v57  }
  0x3b   : > { %1784 = vmatmul.mubr.bf16.gmra.mrb[4].mxu0 %v1925_v46  ;;  %478 = vperm.xlu0 %1920, %v324_v59  }
  0x3c   : > { %1787 = vmatprep.mubr.bf16.mxu0 %v1926_v48  ;;  %483 = vperm.xlu1 %1921, %v325_v61  }
  0x3f   : > { %488 = vperm.xlu0 %1920, %v326_v62  }
  0x40   : > { %493 = vperm.xlu1 %1921, %v327_v63  }
  0x43   : > { %1788 = vmatmul.mubr.bf16.gmra.mrb[8].mxu0 %v1927_v52  ;;  %498 = vperm.xlu0 %1920, %v328_v1  }
  0x44   : > { %1791 = vmatprep.mubr.bf16.mxu0 %v1928_v54  ;;  %503 = vperm.xlu1 %1921, %v329_v3  }
  0x4b   : > { %1792 = vmatmul.mubr.bf16.gmra.mrb[12].mxu0 %v1929_v58 }
  0x4c   : > { %1795 = vmatprep.mubr.bf16.mxu0 %v1930_v60 }
  0x53   : > { %1796 = vmatmul.mubr.bf16.gmra.mrb[16].mxu0 %v1931_v0 }
  0x54   : > { %1799 = vmatprep.mubr.bf16.mxu0 %v1932_v2 }
  0x5b   : > { %1800 = vmatmul.mubr.bf16.gmra.mrb[20].mxu0 %v1933_v4 }
  0x5c   : > { %1803 = vmatprep.mubr.bf16.mxu0 %v1934_v5 }
  0x63   : > { %1804 = vmatmul.mubr.bf16.gmra.mrb[24].mxu0 %v1935_v6 }
  0x64   : > { %1807 = vmatprep.mubr.bf16.mxu0 %v1936_v7 }
  0x6b   : > { %1808 = vmatmul.mubr.bf16.gmra.mrb[28].mxu0 %v1937_v8 }
  0x86   : > { %v349_v9 = vpop.permute.xlu0 %348 }
  0x87   : > { %v359_v10 = vpop.permute.xlu1 %358 }
  0x8a   : > { %v354_v11 = vpop.permute.xlu0 %353 }
  0x8b   : > { %v364_v12 = vpop.permute.xlu1 %363 }
  0x8e   : > { %v369_v13 = vpop.permute.xlu0 %368 }
  0x8f   : > { %v374_v14 = vpop.permute.xlu1 %373 }
  0x92   : > { %v379_v15 = vpop.permute.xlu0 %378 }
  0x93   : > { %v384_v16 = vpop.permute.xlu1 %383 }
  0x96   : > { %v389_v17 = vpop.permute.xlu0 %388 }
  0x97   : > { %v394_v18 = vpop.permute.xlu1 %393 }
  0x9a   : > { %v399_v19 = vpop.permute.xlu0 %398 }
  0x9b   : > { %v404_v20 = vpop.permute.xlu1 %403 }
  0x9e   : > { %v409_v24 = vpop.permute.xlu0 %408 }
  0x9f   : > { %v414_v28 = vpop.permute.xlu1 %413 }
  0xa2   : > { %v419_v34 = vpop.permute.xlu0 %418 }
  0xa3   : > { %v424_v36 = vpop.permute.xlu1 %423 }
  0xa6   : > { %v429_v45 = vpop.permute.xlu0 %428 }
  0xa7   : > { %v434_v46 = vpop.permute.xlu1 %433 }
  0xaa   : > { %v439_v55 = vpop.permute.xlu0 %438 }
  0xab   : > { %v444_v57 = vpop.permute.xlu1 %443 }
  0xae   : > { %v449_v62 = vpop.permute.xlu0 %448 }
  0xaf   : > { %v454_v2 = vpop.permute.xlu1 %453 }
  0xb2   : > { %v459_v8 = vpop.permute.xlu0 %458 }
 0x106   : > { %v1781_v21 = vpop.f32.mrb[0].mxu0 }
 0x107   : > { %v764_v22 = vpop.f32.mrb[1].mxu0  ;;  %v773_v25 = vadd.f32 %v1781_v21, %v359_v10  ;;  %v464_v10 = vpop.permute.xlu1 %463 }
 0x108   : > { %v1782_v23 = vpop.f32.mrb[2].mxu0  ;;  %v765_v29 = vadd.f32 %v764_v22, %v349_v9 }
 0x109   : > { %v776_v26 = vadd.f32 %v1782_v23, %v364_v12  ;;  %v767_v27 = vpop.f32.mrb[3].mxu0 }
 0x10a   : > { %v768_v30 = vadd.f32 %v767_v27, %v354_v11 }
 0x10b   : > { %v956_v31 = vpack.c.bf16 %v776_v26, %v773_v25 }
 0x10c   : > { %v955_v32 = vpack.c.bf16 %v768_v30, %v765_v29 }
 0x10e   : > { %v1785_v33 = vpop.f32.mrb[4].mxu0  ;;  %979 = vxpose.xlu0.c.b16.start [1/8] (narrow) %v955_v32, 64 }
 0x10f   : > { %v780_v35 = vpop.f32.mrb[5].mxu0  ;;  %v789_v38 = vadd.f32 %v1785_v33, %v379_v15 }
 0x110   : > { %v1786_v37 = vpop.f32.mrb[6].mxu0  ;;  %v781_v41 = vadd.f32 %v780_v35, %v369_v13 }
 0x111   : > { %v792_v39 = vadd.f32 %v1786_v37, %v384_v16  ;;  %v783_v40 = vpop.f32.mrb[7].mxu0 }
 0x112   : > { %v784_v42 = vadd.f32 %v783_v40, %v374_v14  ;;  %980 = vxpose.xlu0.c.b16.cont [2/8] (narrow) %v956_v31, 64 }
 0x113   : > { %v958_v43 = vpack.c.bf16 %v792_v39, %v789_v38 }
 0x114   : > { %v957_v44 = vpack.c.bf16 %v784_v42, %v781_v41 }
 0x116   : > { %v1789_v47 = vpop.f32.mrb[8].mxu0  ;;  %981 = vxpose.xlu0.c.b16.cont [3/8] (narrow) %v957_v44, 64 }
 0x117   : > { %v796_v48 = vpop.f32.mrb[9].mxu0  ;;  %v805_v50 = vadd.f32 %v1789_v47, %v399_v19  ;;  %v469_v19 = vpop.permute.xlu0 %468 }
 0x118   : > { %v1790_v49 = vpop.f32.mrb[10].mxu0  ;;  %v797_v53 = vadd.f32 %v796_v48, %v389_v17 }
 0x119   : > { %v808_v51 = vadd.f32 %v1790_v49, %v404_v20  ;;  %v799_v52 = vpop.f32.mrb[11].mxu0  ;;  %v474_v20 = vpop.permute.xlu1 %473 }
 0x11a   : > { %v800_v54 = vadd.f32 %v799_v52, %v394_v18  ;;  %982 = vxpose.xlu0.c.b16.cont [4/8] (narrow) %v958_v43, 64 }
 0x11b   : > { %v960_v56 = vpack.c.bf16 %v808_v51, %v805_v50  ;;  %v479_v29 = vpop.permute.xlu0 %478 }
 0x11c   : > { %v959_v58 = vpack.c.bf16 %v800_v54, %v797_v53 }
 0x11d   : > { %v484_v31 = vpop.permute.xlu1 %483 }
 0x11e   : > { %v1793_v59 = vpop.f32.mrb[12].mxu0  ;;  %983 = vxpose.xlu0.c.b16.cont [5/8] (narrow) %v959_v58, 64 }
 0x11f   : > { %v812_v60 = vpop.f32.mrb[13].mxu0  ;;  %v821_v63 = vadd.f32 %v1793_v59, %v419_v34 }
 0x120   : > { %v1794_v61 = vpop.f32.mrb[14].mxu0  ;;  %v813_v3 = vadd.f32 %v812_v60, %v409_v24 }
 0x121   : > { %v824_v0 = vadd.f32 %v1794_v61, %v424_v36  ;;  %v815_v1 = vpop.f32.mrb[15].mxu0  ;;  %v489_v36 = vpop.permute.xlu0 %488  ;;  %v1938_v61 = vld [vmem:[%s2534_s1 + $0x80] sm:$0xff]  }
 0x122   : > { %v816_v4 = vadd.f32 %v815_v1, %v414_v28  ;;  %984 = vxpose.xlu0.c.b16.cont [6/8] (narrow) %v960_v56, 64  ;;  %v494_v40 = vpop.permute.xlu1 %493  ;;  %1811 = vmatprep.mubr.bf16.mxu0 %v1938_v61  ;;  %v1942_v1 = vld [vmem:[%s2534_s1 + $0xa0] sm:$0xff]  }
 0x123   : > { %v962_v5 = vpack.c.bf16 %v824_v0, %v821_v63  ;;  %v1940_v63 = vld [vmem:[%s2534_s1 + $0x90] sm:$0xff]   ;;  %v1941_v0 = vld [vmem:[%s2534_s1 + $0x98] sm:$0xff]   ;;  %v330_v61 = vld [vmem:[%s2535_s2 + $0x100] sm:$0xff] }
 0x124   : > { %v961_v6 = vpack.c.bf16 %v816_v4, %v813_v3  ;;  %v1944_v3 = vld [vmem:[%s2534_s1 + $0xb0] sm:$0xff]   ;;  %v1945_v4 = vld [vmem:[%s2534_s1 + $0xb8] sm:$0xff]  }
 0x126   : > { %v1797_v7 = vpop.f32.mrb[16].mxu0  ;;  %985 = vxpose.xlu0.c.b16.cont [7/8] (narrow) %v961_v6, 64  ;;  %v504_v48 = vpop.permute.xlu1 %503 }
 0x127   : > { %v828_v9 = vpop.f32.mrb[17].mxu0  ;;  %v837_v12 = vadd.f32 %v1797_v7, %v439_v55 }
 0x128   : > { %v1798_v11 = vpop.f32.mrb[18].mxu0  ;;  %v829_v15 = vadd.f32 %v828_v9, %v429_v45 }
 0x129   : > { %v840_v13 = vadd.f32 %v1798_v11, %v444_v57  ;;  %v831_v14 = vpop.f32.mrb[19].mxu0 }
 0x12a   : > { %v832_v16 = vadd.f32 %v831_v14, %v434_v46  ;;  %986 = vxpose.xlu0.c.b16.end [8/8] (narrow) %v962_v5, 64  ;;  %v499_v46 = vpop.permute.xlu0 %498 }
 0x12b   : > { %v964_v17 = vpack.c.bf16 %v840_v13, %v837_v12 }
 0x12c   : > { %v963_v18 = vpack.c.bf16 %v832_v16, %v829_v15 }
 0x12e   : > { %v1801_v21 = vpop.f32.mrb[20].mxu0  ;;  %1827 = vmatprep.subr.bf16.mxu1 %v963_v18 }
 0x12f   : > { %v844_v22 = vpop.f32.mrb[21].mxu0  ;;  %1828 = vmatpush3.bf16.msra.mxu1 %v963_v18  ;;  %v853_v24 = vadd.f32 %v1801_v21, %v459_v8 }
 0x130   : > { %v1802_v23 = vpop.f32.mrb[22].mxu0  ;;  %1829 = vmatprep.subr.bf16.mxu1 %v964_v17  ;;  %v845_v27 = vadd.f32 %v844_v22, %v449_v62  ;;  %v1939_v62 = vld [vmem:[%s2534_s1 + $0x88] sm:$0xff]  }
 0x131   : > { %v856_v25 = vadd.f32 %v1802_v23, %v464_v10  ;;  %v847_v26 = vpop.f32.mrb[23].mxu0  ;;  %1812 = vmatmul.mubr.bf16.gmra.mrb[32].mxu0 %v1939_v62 }
 0x132   : > { %v848_v28 = vadd.f32 %v847_v26, %v454_v2  ;;  %1815 = vmatprep.mubr.bf16.mxu0 %v1940_v63  ;;  %v1943_v2 = vld [vmem:[%s2534_s1 + $0xa8] sm:$0xff]  }
 0x133   : > { %v966_v30 = vpack.c.bf16 %v856_v25, %v853_v24  ;;  %1830 = vmatpush3.bf16.msra.mxu1 %v964_v17  ;;  %v331_v63 = vld [vmem:[%s2535_s2 + $0x108] sm:$0xff] }
 0x134   : > { %v965_v32 = vpack.c.bf16 %v848_v28, %v845_v27 }
 0x136   : > { %v1805_v33 = vpop.f32.mrb[24].mxu0  ;;  %1831 = vmatprep.subr.bf16.mxu1 %v965_v32 }
 0x137   : > { %v860_v34 = vpop.f32.mrb[25].mxu0  ;;  %1832 = vmatpush3.bf16.msra.mxu1 %v965_v32  ;;  %v869_v37 = vadd.f32 %v1805_v33, %v479_v29 }
 0x138   : > { %v1806_v35 = vpop.f32.mrb[26].mxu0  ;;  %1833 = vmatprep.subr.bf16.mxu1 %v966_v30  ;;  %v861_v41 = vadd.f32 %v860_v34, %v469_v19 }
 0x139   : > { %v872_v38 = vadd.f32 %v1806_v35, %v484_v31  ;;  %v863_v39 = vpop.f32.mrb[27].mxu0  ;;  %1816 = vmatmul.mubr.bf16.gmra.mrb[36].mxu0 %v1941_v0 }
 0x13a   : > { %v864_v42 = vadd.f32 %v863_v39, %v474_v20  ;;  %1819 = vmatprep.mubr.bf16.mxu0 %v1942_v1 }
 0x13b   : > { %v968_v43 = vpack.c.bf16 %v872_v38, %v869_v37  ;;  %1834 = vmatpush3.bf16.msra.mxu1 %v966_v30 }
 0x13c   : > { %v967_v44 = vpack.c.bf16 %v864_v42, %v861_v41 }
 0x13e   : > { %v1809_v45 = vpop.f32.mrb[28].mxu0  ;;  %1835 = vmatprep.subr.bf16.mxu1 %v967_v44 }
 0x13f   : > { %v876_v47 = vpop.f32.mrb[29].mxu0  ;;  %1836 = vmatpush3.bf16.msra.mxu1 %v967_v44  ;;  %v885_v50 = vadd.f32 %v1809_v45, %v499_v46 }
 0x140   : > { %v1810_v49 = vpop.f32.mrb[30].mxu0  ;;  %1837 = vmatprep.subr.bf16.mxu1 %v968_v43  ;;  %v877_v53 = vadd.f32 %v876_v47, %v489_v36 }
 0x141   : > { %v888_v51 = vadd.f32 %v1810_v49, %v504_v48  ;;  %v879_v52 = vpop.f32.mrb[31].mxu0  ;;  %1820 = vmatmul.mubr.bf16.gmra.mrb[40].mxu0 %v1943_v2 }
 0x142   : > { %v880_v54 = vadd.f32 %v879_v52, %v494_v40  ;;  %1823 = vmatprep.mubr.bf16.mxu0 %v1944_v3  ;;  %v332_v3 = vld [vmem:[%s2535_s2 + $0x110] sm:$0xff] }
 0x143   : > { %v970_v55 = vpack.c.bf16 %v888_v51, %v885_v50  ;;  %1838 = vmatpush3.bf16.msra.mxu1 %v968_v43 }
 0x144   : > { %v969_v56 = vpack.c.bf16 %v880_v54, %v877_v53 }
 0x146   : > { %1839 = vmatprep.subr.bf16.mxu1 %v969_v56 }
 0x147   : > { %1840 = vmatpush3.bf16.msra.mxu1 %v969_v56 }
 0x148   : > { %1841 = vmatprep.subr.bf16.mxu1 %v970_v55 }
 0x149   : > { %1824 = vmatmul.mubr.bf16.gmra.mrb[44].mxu0 %v1945_v4  ;;  %v334_v4 = vld [vmem:[%s2535_s2 + $0x120] sm:$0xff] }
 0x14b   : > { %1842 = vmatpush3.bf16.msra.mxu1 %v970_v55 }
 0x174   : > { %v987_v57 = vpop.trf.xlu0 }
 0x175   : > { %1843 = vmatprep.mubr.bf16.mxu1 %v987_v57 }
 0x178   : > { %v988_v58 = vpop.trf.xlu0 }
 0x179   : > { %1844 = vmatmul.mubr.bf16.vlgmr.msra.gmra.mrb[0].mxu1 %v988_v58 }
 0x17c   : > { %v989_v59 = vpop.trf.xlu0 }
 0x17d   : > { %1847 = vmatprep.mubr.bf16.mxu1 %v989_v59 }
 0x180   : > { %v990_v60 = vpop.trf.xlu0 }
 0x181   : > { %1848 = vmatmul.mubr.bf16.gmra.mrb[4].mxu1 %v990_v60 }
 0x204   : > { %v2286_v62 = vpop.f32.mrb[32].mxu0 }
 0x205   : > { %v2291_v0 = vpop.f32.mrb[33].mxu0 }
 0x206   : > { %v2293_v1 = vpop.f32.mrb[34].mxu0 }
 0x207   : > { %v2295_v2 = vpop.f32.mrb[35].mxu0 }
 0x24c   : > { %v1845_v5 = vpop.f32.mrb[0].mxu1 }
 0x24d   : > { %v1029_v6 = vpop.f32.mrb[1].mxu1  ;;  %v1067_v14 = vsel %vm1060_vm0, %v1845_v5, -inf }
 0x24e   : > { %v1846_v7 = vpop.f32.mrb[2].mxu1  ;;  %v1061_v8 = vsel %vm1060_vm0, %v1029_v6, -inf }
 0x24f   : > { %1062 = vmax.xlane.f32.xlu1 %v1061_v8  ;;  %v1032_v9 = vpop.f32.mrb[3].mxu1  ;;  %v1070_v17 = vsel %vm1060_vm0, %v1846_v7, -inf  ;;  %v336_v8 = vld [vmem:[%s2535_s2 + $0x130] sm:$0xff] }
 0x250   : > { %v1064_v10 = vsel %vm1060_vm0, %v1032_v9, -inf }
 0x253   : > { %1065 = vmax.xlane.f32.xlu1 %v1064_v10  ;;  %v338_v10 = vld [vmem:[%s2535_s2 + $0x140] sm:$0xff] }
 0x254   : > { %v1849_v11 = vpop.f32.mrb[4].mxu1 }
 0x255   : > { %v1045_v12 = vpop.f32.mrb[5].mxu1  ;;  %v1079_v20 = vsel %vm1060_vm0, %v1849_v11, -inf }
 0x256   : > { %v1850_v13 = vpop.f32.mrb[6].mxu1  ;;  %v1073_v18 = vsel %vm1060_vm0, %v1045_v12, -inf }
 0x257   : > { %1068 = vmax.xlane.f32.xlu1 %v1067_v14  ;;  %v1082_v15 = vsel %vm1060_vm0, %v1850_v13, -inf  ;;  %v1048_v16 = vpop.f32.mrb[7].mxu1  ;;  %v337_v14 = vld [vmem:[%s2535_s2 + $0x138] sm:$0xff] }
 0x258   : > { %1083 = vmax.xlane.f32.xlu0 %v1082_v15  ;;  %v1076_v19 = vsel %vm1060_vm0, %v1048_v16, -inf }
 0x25b   : > { %1071 = vmax.xlane.f32.xlu1 %v1070_v17  ;;  %v339_v17 = vld [vmem:[%s2535_s2 + $0x148] sm:$0xff] }
 0x25f   : > { %1074 = vmax.xlane.f32.xlu1 %v1073_v18  ;;  %v342_v18 = vld [vmem:[%s2535_s2 + $0x160] sm:$0xff] }
 0x263   : > { %1077 = vmax.xlane.f32.xlu1 %v1076_v19 }
 0x267   : > { %1080 = vmax.xlane.f32.xlu1 %v1079_v20 }
 0x2dc   : > { %v1063_v21 = vpop.xlane.xlu1 %1062 }
 0x2dd   : > { %v1085_v23 = vsub.f32 %v1029_v6, %v1063_v21 }
 0x2df   : > { %v1093_v26 = vmul.f32 1.442695, %v1085_v23 }
 0x2e0   : > { %v1066_v22 = vpop.xlane.xlu1 %1065 }
 0x2e1   : > { %v1086_v27 = vsub.f32 %v1032_v9, %v1066_v22  ;;  %v335_v9 = vld [vmem:[%s2535_s2 + $0x128] sm:$0xff]  ;;  %v341_v22 = vld [vmem:[%s2535_s2 + $0x158] sm:$0xff] }
 0x2e3   : > { %v1095_v31 = vmul.f32 1.442695, %v1086_v27 }
 0x2e4   : > { %v1069_v24 = vpop.xlane.xlu1 %1068 }
 0x2e5   : > { %v1087_v25 = vsub.f32 %v1845_v5, %v1069_v24  ;;  %v1084_v33 = vpop.xlane.xlu0 %1083  ;;  %v2303_v5 = vpop.f32.mrb[36].mxu0  ;;  %v344_v24 = vld [vmem:[%s2535_s2 + $0x170] sm:$0xff] }
 0x2e6   : > { %v1092_v35 = vsub.f32 %v1850_v13, %v1084_v33  ;;  %v2305_v6 = vpop.f32.mrb[37].mxu0  ;;  %v1313_v33 = vld [vmem:[%s2537_s4 + $0x18] sm:$0xff] }
 0x2e7   : > { %v1097_v28 = vmul.f32 1.442695, %v1087_v25  ;;  %v343_v25 = vld [vmem:[%s2535_s2 + $0x168] sm:$0xff] }
 0x2e8   : > { %v1072_v29 = vpop.xlane.xlu1 %1071  ;;  %v1107_v39 = vmul.f32 1.442695, %v1092_v35  ;;  %v1315_v35 = vld [vmem:[%s2537_s4 + $0x28] sm:$0xff] }
 0x2e9   : > { %1954 = vpow2.f32 %v1097_v28  ;;  %v1088_v30 = vsub.f32 %v1846_v7, %v1072_v29  ;;  %v333_v7 = vld [vmem:[%s2535_s2 + $0x118] sm:$0xff] }
 0x2ea   : > { %1956 = vpow2.f32 %v1093_v26  ;;  %v1310_v26 = vld [vmem:[%s2537_s4] sm:$0xff]  ;;  %v345_v29 = vld [vmem:[%s2535_s2 + $0x178] sm:$0xff] }
 0x2eb   : > { %v1099_v32 = vmul.f32 1.442695, %v1088_v30  ;;  %v1312_v30 = vld [vmem:[%s2537_s4 + $0x10] sm:$0xff] }
 0x2ec   : > { %v1075_v34 = vpop.xlane.xlu1 %1074 }
 0x2ed   : > { %1958 = vpow2.f32 %v1099_v32  ;;  %v1089_v40 = vsub.f32 %v1045_v12, %v1075_v34  ;;  %v1314_v32 = vld [vmem:[%s2537_s4 + $0x20] sm:$0xff]  ;;  %v1316_v34 = vld [vmem:[%s2537_s4 + $0x30] sm:$0xff] }
 0x2ee   : > { %1960 = vpow2.f32 %v1095_v31  ;;  %v1311_v31 = vld [vmem:[%s2537_s4 + $0x8] sm:$0xff] }
 0x2ef   : > { %v1101_v47 = vmul.f32 1.442695, %v1089_v40  ;;  %v1319_v40 = vld [vmem:[%s2537_s4 + $0x48] sm:$0xff] }
 0x2f0   : > { %v1078_v36 = vpop.xlane.xlu1 %1077 }
 0x2f1   : > { %v1090_v37 = vsub.f32 %v1048_v16, %v1078_v36  ;;  %v340_v16 = vld [vmem:[%s2535_s2 + $0x150] sm:$0xff]  ;;  %v1318_v36 = vld [vmem:[%s2537_s4 + $0x40] sm:$0xff] }
 0x2f3   : > { %v2251_v38 = vpop.eup %1954  ;;  %v1103_v41 = vmul.f32 1.442695, %v1090_v37  ;;  %v1317_v37 = vld [vmem:[%s2537_s4 + $0x38] sm:$0xff] }
 0x2f4   : > { %v1081_v42 = vpop.xlane.xlu1 %1080  ;;  %v1115_v43 = vsel %vm1060_vm0, %v2251_v38, 0.0  ;;  %v2255_v44 = vpop.eup %1956 }
 0x2f5   : > { %1962 = vpow2.f32 %v1103_v41  ;;  %v1091_v45 = vsub.f32 %v1849_v11, %v1081_v42  ;;  %1116 = vadd.xlane.f32.xlu1 %v1115_v43  ;;  %v1109_v50 = vsel %vm1060_vm0, %v2255_v44, 0.0  ;;  %v2319_v11 = vpop.f32.mrb[38].mxu0  ;;  %v1322_v41 = vld [vmem:[%s2537_s4 + $0x60] sm:$0xff]  ;;  %v1321_v42 = vld [vmem:[%s2537_s4 + $0x58] sm:$0xff]  ;;  %v1324_v43 = vld [vmem:[%s2537_s4 + $0x70] sm:$0xff] }
 0x2f6   : > { %1964 = vpow2.f32 %v1107_v39  ;;  %v2321_v12 = vpop.f32.mrb[39].mxu0  ;;  %v1320_v39 = vld [vmem:[%s2537_s4 + $0x50] sm:$0xff] }
 0x2f7   : > { %v2257_v46 = vpop.eup %1958  ;;  %v1105_v48 = vmul.f32 1.442695, %v1091_v45  ;;  %v2323_v13 = vpop.f32.mrb[40].mxu0  ;;  %v1323_v45 = vld [vmem:[%s2537_s4 + $0x68] sm:$0xff] }
 0x2f8   : > { %v1118_v49 = vsel %vm1060_vm0, %v2257_v46, 0.0  ;;  %v2263_v51 = vpop.eup %1960  ;;  %v2328_v15 = vpop.f32.mrb[41].mxu0 }
 0x2f9   : > { %1966 = vpow2.f32 %v1105_v48  ;;  %1119 = vadd.xlane.f32.xlu0 %v1118_v49  ;;  %1110 = vadd.xlane.f32.xlu1 %v1109_v50  ;;  %v1112_v52 = vsel %vm1060_vm0, %v2263_v51, 0.0  ;;  %v2339_v19 = vpop.f32.mrb[42].mxu0 }
 0x2fa   : > { %1968 = vpow2.f32 %v1101_v47  ;;  %v2341_v20 = vpop.f32.mrb[43].mxu0  ;;  %v1325_v47 = vld [vmem:[%s2537_s4 + $0x78] sm:$0xff] }
 0x2fb   : > { %v2343_v21 = vpop.f32.mrb[44].mxu0 }
 0x2fc   : > { %v2348_v23 = vpop.f32.mrb[45].mxu0 }
 0x2fd   : > { %1113 = vadd.xlane.f32.xlu1 %v1112_v52  ;;  %v2359_v27 = vpop.f32.mrb[46].mxu0 }
 0x2fe   : > { %v2361_v28 = vpop.f32.mrb[47].mxu0 }
 0x2ff   : > { %v2267_v53 = vpop.eup %1962 }
 0x300   : > { %v1124_v54 = vsel %vm1060_vm0, %v2267_v53, 0.0  ;;  %v2271_v55 = vpop.eup %1964 }
 0x301   : > { %1125 = vadd.xlane.f32.xlu0 %v1124_v54  ;;  %v1130_v57 = vsel %vm1060_vm0, %v2271_v55, 0.0 }
 0x303   : > { %v2273_v56 = vpop.eup %1966 }
 0x304   : > { %v1127_v58 = vsel %vm1060_vm0, %v2273_v56, 0.0  ;;  %v2279_v59 = vpop.eup %1968 }
 0x305   : > { %1131 = vadd.xlane.f32.xlu0 %v1130_v57  ;;  %1128 = vadd.xlane.f32.xlu1 %v1127_v58  ;;  %v1121_v60 = vsel %vm1060_vm0, %v2279_v59, 0.0 }
 0x309   : > { %1122 = vadd.xlane.f32.xlu1 %v1121_v60 }
 0x31a   : > { %508 = vperm.xlu1 %1921, %v330_v61  }
 0x31b   : > { %513 = vperm.xlu0 %1920, %v331_v63  }
 0x31e   : > { %518 = vperm.xlu1 %1921, %v332_v3  }
 0x31f   : > { %528 = vperm.xlu0 %1920, %v334_v4  }
 0x322   : > { %523 = vperm.xlu1 %1921, %v333_v7  }
 0x323   : > { %538 = vperm.xlu0 %1920, %v336_v8  }
 0x326   : > { %533 = vperm.xlu1 %1921, %v335_v9  }
 0x327   : > { %548 = vperm.xlu0 %1920, %v338_v10  }
 0x32a   : > { %543 = vperm.xlu1 %1921, %v337_v14  }
 0x32b   : > { %558 = vperm.xlu0 %1920, %v340_v16  }
 0x32e   : > { %553 = vperm.xlu1 %1921, %v339_v17  }
 0x32f   : > { %568 = vperm.xlu0 %1920, %v342_v18  }
 0x332   : > { %563 = vperm.xlu1 %1921, %v341_v22  }
 0x333   : > { %578 = vperm.xlu0 %1920, %v344_v24  }
 0x336   : > { %573 = vperm.xlu1 %1921, %v343_v25  }
 0x337   : > { %1328 = vperm.xlu0 %1920, %v1310_v26  }
 0x33a   : > { %583 = vperm.xlu1 %1921, %v345_v29  }
 0x33b   : > { %1338 = vperm.xlu0 %1920, %v1312_v30  }
 0x33e   : > { %1333 = vperm.xlu1 %1921, %v1311_v31  }
 0x33f   : > { %1348 = vperm.xlu0 %1920, %v1314_v32  }
 0x342   : > { %1343 = vperm.xlu1 %1921, %v1313_v33  }
 0x343   : > { %1358 = vperm.xlu0 %1920, %v1316_v34  }
 0x346   : > { %1353 = vperm.xlu1 %1921, %v1315_v35  }
 0x347   : > { %1368 = vperm.xlu0 %1920, %v1318_v36  }
 0x34a   : > { %1363 = vperm.xlu1 %1921, %v1317_v37  }
 0x34b   : > { %1378 = vperm.xlu0 %1920, %v1320_v39  }
 0x34e   : > { %1373 = vperm.xlu1 %1921, %v1319_v40  }
 0x34f   : > { %1388 = vperm.xlu0 %1920, %v1322_v41  }
 0x352   : > { %1383 = vperm.xlu1 %1921, %v1321_v42  }
 0x353   : > { %1398 = vperm.xlu0 %1920, %v1324_v43  }
 0x356   : > { %1393 = vperm.xlu1 %1921, %v1323_v45  }
 0x35a   : > { %1403 = vperm.xlu1 %1921, %v1325_v47  }
 0x382   : > { %v1117_v48 = vpop.xlane.xlu1 %1116 }
 0x386   : > { %v1120_v49 = vpop.xlane.xlu0 %1119  ;;  %v1111_v50 = vpop.xlane.xlu1 %1110 }
 0x387   : > { %1970 = vrcp.f32 %v1120_v49 }
 0x388   : > { %1972 = vrcp.f32 %v1111_v50 }
 0x389   : > { %1974 = vrcp.f32 %v1117_v48 }
 0x38a   : > { %v1114_v52 = vpop.xlane.xlu1 %1113 }
 0x38b   : > { %1976 = vrcp.f32 %v1114_v52 }
 0x38e   : > { %v1126_v54 = vpop.xlane.xlu0 %1125 }
 0x38f   : > { %1978 = vrcp.f32 %v1126_v54 }
 0x391   : > { %v1971_v57 = vpop.eup %1970 }
 0x392   : > { %v1129_v58 = vpop.xlane.xlu1 %1128  ;;  %v1973_v60 = vpop.eup %1972  ;;  %v1144_v9 = vmul.f32 %v1971_v57, %v2257_v46 }
 0x393   : > { %v1975_v61 = vpop.eup %1974  ;;  %v1132_v3 = vpop.xlane.xlu0 %1131  ;;  %v1141_v7 = vmul.f32 %v1973_v60, %v2255_v44 }
 0x394   : > { %v1143_v14 = vmul.f32 %v1975_v61, %v2251_v38 }
 0x395   : > { %v1977_v63 = vpop.eup %1976 }
 0x396   : > { %v1123_v4 = vpop.xlane.xlu1 %1122  ;;  %v1142_v8 = vmul.f32 %v1977_v63, %v2263_v51  ;;  %v1150_v22 = vpack.c.bf16 %v1144_v9, %v1143_v14 }
 0x397   : > { %1980 = vrcp.f32 %v1123_v4 }
 0x398   : > { %1982 = vrcp.f32 %v1132_v3  ;;  %v1149_v10 = vpack.c.bf16 %v1142_v8, %v1141_v7  ;;  %v1181_v32 = vsel %vm1060_vm0, %v1150_v22, 0 }
 0x399   : > { %1984 = vrcp.f32 %v1129_v58  ;;  %v1979_v26 = vpop.eup %1978 }
 0x39a   : > { %v514_v16 = vpop.permute.xlu0 %513  ;;  %1907 = vmatprep.subr.msk.bf16.mxu1 %vm1060_vm0, %v1149_v10  ;;  %v509_v17 = vpop.permute.xlu1 %508  ;;  %v1178_v18 = vsel %vm1060_vm0, %v1149_v10, 0 }
 0x39b   : > { %v896_v24 = vadd.f32 %v2295_v2, %v514_v16  ;;  %v893_v44 = vadd.f32 %v2291_v0, %v509_v17  ;;  %1852 = vmatpush3.bf16.xpose.msra.mxu1 %v1178_v18  ;;  %v1146_v2 = vmul.f32 %v1979_v26, %v2267_v53 }
 0x39c   : > { %1908 = vmatprep.subr.msk.bf16.mxu1 %vm1060_vm0, %v1150_v22 }
 0x39d   : > { %v971_v46 = vpack.c.bf16 %v896_v24, %v893_v44 }
 0x39e   : > { %v529_v51 = vpop.permute.xlu0 %528  ;;  %v519_v25 = vpop.permute.xlu1 %518 }
 0x39f   : > { %1859 = vmatprep.mubr.msk.bf16.mxu1 %vm1060_vm0, %v971_v46  ;;  %v901_v34 = vadd.f32 %v2286_v62, %v519_v25 }
 0x3a1   : > { %v1981_v38 = vpop.eup %1980 }
 0x3a2   : > { %v1983_v29 = vpop.eup %1982  ;;  %v539_v30 = vpop.permute.xlu0 %538  ;;  %v1145_v33 = vmul.f32 %v1981_v38, %v2279_v59  ;;  %v909_v59 = vadd.f32 %v2305_v6, %v529_v51 }
 0x3a3   : > { %v524_v31 = vpop.permute.xlu1 %523  ;;  %v1985_v0 = vpop.eup %1984  ;;  %1854 = vmatpush3.bf16.xpose.msra.mxu1 %v1181_v32  ;;  %v1148_v42 = vmul.f32 %v1983_v29, %v2271_v55  ;;  %v917_v47 = vadd.f32 %v2303_v5, %v539_v30 }
 0x3a4   : > { %v904_v35 = vadd.f32 %v2293_v1, %v524_v31  ;;  %v1151_v36 = vpack.c.bf16 %v1146_v2, %v1145_v33  ;;  %v1147_v41 = vmul.f32 %v1985_v0, %v2273_v56  ;;  %v1947_v2 = vld [vmem:[%s2536_s3 + $0x8] sm:$0xff]   ;;  %v1948_v0 = vld [vmem:[%s2536_s3 + $0x10] sm:$0xff]  }
 0x3a6   : > { %v972_v37 = vpack.c.bf16 %v904_v35, %v901_v34  ;;  %v549_v39 = vpop.permute.xlu0 %548  ;;  %1909 = vmatprep.subr.msk.bf16.mxu1 %vm1060_vm0, %v1151_v36  ;;  %v1184_v62 = vsel %vm1060_vm0, %v1151_v36, 0  ;;  %v1152_v1 = vpack.c.bf16 %v1148_v42, %v1147_v41  ;;  %v1949_v34 = vld [vmem:[%s2536_s3 + $0x18] sm:$0xff]   ;;  %v1950_v35 = vld [vmem:[%s2536_s3 + $0x20] sm:$0xff]   ;;  %v1951_v36 = vld [vmem:[%s2536_s3 + $0x28] sm:$0xff]  }
 0x3a7   : > { %v534_v40 = vpop.permute.xlu1 %533  ;;  %v925_v55 = vadd.f32 %v2328_v15, %v549_v39  ;;  %v1953_v39 = vld [vmem:[%s2536_s3 + $0x38] sm:$0xff]  }
 0x3a8   : > { %v912_v53 = vadd.f32 %v2321_v12, %v534_v40  ;;  %v1187_v57 = vsel %vm1060_vm0, %v1152_v1, 0 }
 0x3aa   : > { %v973_v43 = vpack.c.bf16 %v912_v53, %v909_v59  ;;  %v559_v49 = vpop.permute.xlu0 %558 }
 0x3ab   : > { %v544_v45 = vpop.permute.xlu1 %543  ;;  %1856 = vmatpush3.bf16.xpose.msra.mxu1 %v1184_v62  ;;  %v933_v58 = vadd.f32 %v2323_v13, %v559_v49 }
 0x3ac   : > { %v920_v48 = vadd.f32 %v2319_v11, %v544_v45  ;;  %1910 = vmatprep.subr.msk.bf16.mxu1 %vm1060_vm0, %v1152_v1 }
 0x3ae   : > { %v974_v56 = vpack.c.bf16 %v920_v48, %v917_v47  ;;  %v569_v52 = vpop.permute.xlu0 %568 }
 0x3af   : > { %v554_v50 = vpop.permute.xlu1 %553  ;;  %v941_v61 = vadd.f32 %v2348_v23, %v569_v52  ;;  %v1987_v52 = vld [vmem:[%s2060_s25] sm:$0xff] }
 0x3b0   : > { %v928_v6 = vadd.f32 %v2341_v20, %v554_v50  ;;  %v1986_v50 = vld [vmem:[%s2060_s25 + $0x10] sm:$0xff] }
 0x3b2   : > { %v975_v12 = vpack.c.bf16 %v928_v6, %v925_v55  ;;  %v579_v3 = vpop.permute.xlu0 %578 }
 0x3b3   : > { %v564_v54 = vpop.permute.xlu1 %563  ;;  %1858 = vmatpush3.bf16.xpose.msra.mxu1 %v1187_v57  ;;  %v949_v4 = vadd.f32 %v2343_v21, %v579_v3 }
 0x3b4   : > { %v936_v5 = vadd.f32 %v2339_v19, %v564_v54  ;;  %v1946_v19 = vld [vmem:[%s2536_s3] sm:$0xff]  }
 0x3b6   : > { %v976_v11 = vpack.c.bf16 %v936_v5, %v933_v58  ;;  %v1329_v40 = vpop.permute.xlu0 %1328  ;;  %v1988_v58 = vld [vmem:[%s2060_s25 + $0x18] sm:$0xff] }
 0x3b7   : > { %v574_v60 = vpop.permute.xlu1 %573 }
 0x3b8   : > { %v944_v63 = vadd.f32 %v2361_v28, %v574_v60  ;;  %v1989_v60 = vld [vmem:[%s2060_s25 + $0x8] sm:$0xff] }
 0x3ba   : > { %v977_v15 = vpack.c.bf16 %v944_v63, %v941_v61  ;;  %1860 = vmatmul.mubr.msk.bf16.vlgmr.msra.gmra.mrb[8].mxu1 %vm1060_vm0, %v972_v37  ;;  %v1952_v37 = vld [vmem:[%s2536_s3 + $0x30] sm:$0xff]   ;;  %v1339_v42 = vpop.permute.xlu0 %1338 }
 0x3bb   : > { %v584_v20 = vpop.permute.xlu1 %583  ;;  %1863 = vmatprep.mubr.msk.bf16.mxu1 %vm1060_vm0, %v973_v43 }
 0x3bc   : > { %v952_v7 = vadd.f32 %v2359_v27, %v584_v20 }
 0x3be   : > { %v978_v13 = vpack.c.bf16 %v952_v7, %v949_v4  ;;  %v1349_v53 = vpop.permute.xlu0 %1348 }
 0x3bf   : > { %v1334_v41 = vpop.permute.xlu1 %1333 }
 0x3c2   : > { %1864 = vmatmul.mubr.msk.bf16.gmra.mrb[12].mxu1 %vm1060_vm0, %v974_v56  ;;  %v1359_v45 = vpop.permute.xlu0 %1358 }
 0x3c3   : > { %1867 = vmatprep.mubr.msk.bf16.mxu1 %vm1060_vm0, %v975_v12  ;;  %v1344_v59 = vpop.permute.xlu1 %1343 }
 0x3c7   : > { %v1354_v43 = vpop.permute.xlu1 %1353 }
 0x3ca   : > { %1868 = vmatmul.mubr.msk.bf16.gmra.mrb[16].mxu1 %vm1060_vm0, %v976_v11  ;;  %v1369_v11 = vpop.permute.xlu0 %1368 }
 0x3cb   : > { %1871 = vmatprep.mubr.msk.bf16.mxu1 %vm1060_vm0, %v977_v15  ;;  %v1364_v48 = vpop.permute.xlu1 %1363 }
 0x3cf   : > { %v1374_v63 = vpop.permute.xlu1 %1373 }
 0x3d2   : > { %1872 = vmatmul.mubr.msk.bf16.gmra.mrb[20].mxu1 %vm1060_vm0, %v978_v13  ;;  %v1990_v13 = vld [vmem:[%s2060_s25 + $0x30] sm:$0xff] }
 0x3d3   : > { %1891 = vmatprep.mubr.bf16.mxu1 %v1946_v19 }
 0x48d   : > { %v1861_v21 = vpop.f32.mrb[8].mxu1 }
 0x48e   : > { %v1223_v23 = vpop.f32.mrb[9].mxu1 }
 0x48f   : > { %v1862_v27 = vpop.f32.mrb[10].mxu1 }
 0x490   : > { %v1303_v28 = vpack.c.bf16 %v1862_v27, %v1861_v21  ;;  %v1226_v8 = vpop.f32.mrb[11].mxu1  ;;  %v1379_v27 = vpop.permute.xlu0 %1378 }
 0x491   : > { %v1302_v9 = vpack.c.bf16 %v1226_v8, %v1223_v23 }
 0x493   : > { %1875 = vmatprep.subr.bf16.mxu1 %v1302_v9 }
 0x494   : > { %1876 = vmatpush3.bf16.msra.mxu1 %v1302_v9 }
 0x495   : > { %v1865_v10 = vpop.f32.mrb[12].mxu1  ;;  %1877 = vmatprep.subr.bf16.mxu1 %v1303_v28 }
 0x496   : > { %v1239_v14 = vpop.f32.mrb[13].mxu1 }
 0x497   : > { %v1866_v16 = vpop.f32.mrb[14].mxu1 }
 0x498   : > { %v1305_v17 = vpack.c.bf16 %v1866_v16, %v1865_v10  ;;  %v1242_v18 = vpop.f32.mrb[15].mxu1  ;;  %1878 = vmatpush3.bf16.msra.mxu1 %v1303_v28  ;;  %v1991_v28 = vld [vmem:[%s2060_s25 + $0x20] sm:$0xff]  ;;  %v1992_v10 = vld [vmem:[%s2060_s25 + $0x38] sm:$0xff]  ;;  %v1384_v16 = vpop.permute.xlu1 %1383 }
 0x499   : > { %v1304_v22 = vpack.c.bf16 %v1242_v18, %v1239_v14 }
 0x49b   : > { %1879 = vmatprep.subr.bf16.mxu1 %v1304_v22 }
 0x49c   : > { %1880 = vmatpush3.bf16.msra.mxu1 %v1304_v22 }
 0x49d   : > { %v1869_v24 = vpop.f32.mrb[16].mxu1  ;;  %1881 = vmatprep.subr.bf16.mxu1 %v1305_v17 }
 0x49e   : > { %v1255_v44 = vpop.f32.mrb[17].mxu1 }
 0x49f   : > { %v1870_v46 = vpop.f32.mrb[18].mxu1 }
 0x4a0   : > { %v1307_v51 = vpack.c.bf16 %v1870_v46, %v1869_v24  ;;  %v1258_v25 = vpop.f32.mrb[19].mxu1  ;;  %1882 = vmatpush3.bf16.msra.mxu1 %v1305_v17  ;;  %v1993_v17 = vld [vmem:[%s2060_s25 + $0x28] sm:$0xff]  ;;  %v1389_v46 = vpop.permute.xlu0 %1388 }
 0x4a1   : > { %v1306_v26 = vpack.c.bf16 %v1258_v25, %v1255_v44 }
 0x4a3   : > { %1883 = vmatprep.subr.bf16.mxu1 %v1306_v26 }
 0x4a4   : > { %1884 = vmatpush3.bf16.msra.mxu1 %v1306_v26  ;;  %v1994_v26 = vld [vmem:[%s2060_s25 + $0x50] sm:$0xff] }
 0x4a5   : > { %v1873_v38 = vpop.f32.mrb[20].mxu1  ;;  %1885 = vmatprep.subr.bf16.mxu1 %v1307_v51 }
 0x4a6   : > { %v1271_v29 = vpop.f32.mrb[21].mxu1 }
 0x4a7   : > { %v1874_v30 = vpop.f32.mrb[22].mxu1 }
 0x4a8   : > { %v1309_v31 = vpack.c.bf16 %v1874_v30, %v1873_v38  ;;  %v1274_v32 = vpop.f32.mrb[23].mxu1  ;;  %1886 = vmatpush3.bf16.msra.mxu1 %v1307_v51 }
 0x4a9   : > { %v1308_v33 = vpack.c.bf16 %v1274_v32, %v1271_v29  ;;  %v1995_v32 = vld [vmem:[%s2060_s25 + $0x40] sm:$0xff] }
 0x4ab   : > { %1887 = vmatprep.subr.bf16.mxu1 %v1308_v33 }
 0x4ac   : > { %1888 = vmatpush3.bf16.msra.mxu1 %v1308_v33 }
 0x4ad   : > { %1889 = vmatprep.subr.bf16.mxu1 %v1309_v31 }
 0x4b0   : > { %1890 = vmatpush3.bf16.msra.mxu1 %v1309_v31  ;;  %v1394_v31 = vpop.permute.xlu1 %1393 }
 0x4b3   : > { %1892 = vmatmul.mubr.bf16.vlgmr.msra.gmra.mrb[24].mxu1 %v1947_v2 }
 0x4b4   : > { %1895 = vmatprep.mubr.bf16.mxu1 %v1948_v0  ;;  %v1996_v0 = vld [vmem:[%s2060_s25 + $0x58] sm:$0xff] }
 0x4bb   : > { %1896 = vmatmul.mubr.bf16.gmra.mrb[28].mxu1 %v1949_v34 }
 0x4bc   : > { %1899 = vmatprep.mubr.bf16.mxu1 %v1950_v35  ;;  %v1997_v35 = vld [vmem:[%s2060_s25 + $0x48] sm:$0xff] }
 0x4c3   : > { %1900 = vmatmul.mubr.bf16.gmra.mrb[32].mxu1 %v1951_v36 }
 0x4c4   : > { %1903 = vmatprep.mubr.bf16.mxu1 %v1952_v37  ;;  %v1399_v37 = vpop.permute.xlu0 %1398 }
 0x4cb   : > { %1904 = vmatmul.mubr.bf16.gmra.mrb[36].mxu1 %v1953_v39 }
 0x586   : > { %v1893_v62 = vpop.f32.mrb[24].mxu1 }
 0x587   : > { %v1497_v1 = vadd.f32 %v1893_v62, %v1339_v42  ;;  %v1488_v47 = vpop.f32.mrb[25].mxu1  ;;  %v1404_v42 = vpop.permute.xlu1 %1403 }
 0x588   : > { %v1489_v49 = vadd.f32 %v1488_v47, %v1329_v40  ;;  %v1894_v56 = vpop.f32.mrb[26].mxu1  ;;  %v1999_v47 = vld [vmem:[%s2060_s25 + $0x60] sm:$0xff] }
 0x589   : > { %v1553_v55 = vadd.f32 %v1986_v50, %v1497_v1  ;;  %v1500_v6 = vadd.f32 %v1894_v56, %v1344_v59  ;;  %v1491_v12 = vpop.f32.mrb[27].mxu1  ;;  %v2000_v56 = vld [vmem:[%s2060_s25 + $0x78] sm:$0xff] }
 0x58a   : > { %v1551_v54 = vadd.f32 %v1987_v52, %v1489_v49  ;;  %v1492_v57 = vadd.f32 %v1491_v12, %v1334_v41 }
 0x58b   : > { %1569 = vst.msk [vmem:[%s2480_s29 + $0x10] sm:$0xff] %vm1060_vm0, %v1553_v55  ;;  %v1554_v5 = vadd.f32 %v1988_v58, %v1500_v6  ;;  %v2001_v55 = vld [vmem:[%s2060_s25 + $0x68] sm:$0xff] }
 0x58c   : > { %1567 = vst.msk [vmem:[%s2480_s29] sm:$0xff] %vm1060_vm0, %v1551_v54  ;;  %v1552_v61 = vadd.f32 %v1989_v60, %v1492_v57 }
 0x58d   : > { %1570 = vst.msk [vmem:[%s2480_s29 + $0x18] sm:$0xff] %vm1060_vm0, %v1554_v5 }
 0x58e   : > { %1568 = vst.msk [vmem:[%s2480_s29 + $0x8] sm:$0xff] %vm1060_vm0, %v1552_v61  ;;  %v1897_v3 = vpop.f32.mrb[28].mxu1 }
 0x58f   : > { %v1513_v15 = vadd.f32 %v1897_v3, %v1359_v45  ;;  %v1504_v20 = vpop.f32.mrb[29].mxu1 }
 0x590   : > { %v1505_v4 = vadd.f32 %v1504_v20, %v1349_v53  ;;  %v1898_v7 = vpop.f32.mrb[30].mxu1 }
 0x591   : > { %v1557_v19 = vadd.f32 %v1990_v13, %v1513_v15  ;;  %v1516_v21 = vadd.f32 %v1898_v7, %v1364_v48  ;;  %v1507_v23 = vpop.f32.mrb[31].mxu1 }
 0x592   : > { %v1555_v8 = vadd.f32 %v1991_v28, %v1505_v4  ;;  %v1508_v9 = vadd.f32 %v1507_v23, %v1354_v43  ;;  %v1998_v43 = vld [vmem:[%s2060_s25 + $0x70] sm:$0xff] }
 0x593   : > { %1573 = vst.msk [vmem:[%s2480_s29 + $0x30] sm:$0xff] %vm1060_vm0, %v1557_v19  ;;  %v1558_v14 = vadd.f32 %v1992_v10, %v1516_v21 }
 0x594   : > { %1571 = vst.msk [vmem:[%s2480_s29 + $0x20] sm:$0xff] %vm1060_vm0, %v1555_v8  ;;  %v1556_v18 = vadd.f32 %v1993_v17, %v1508_v9 }
 0x595   : > { %1574 = vst.msk [vmem:[%s2480_s29 + $0x38] sm:$0xff] %vm1060_vm0, %v1558_v14 }
 0x596   : > { %1572 = vst.msk [vmem:[%s2480_s29 + $0x28] sm:$0xff] %vm1060_vm0, %v1556_v18  ;;  %v1901_v22 = vpop.f32.mrb[32].mxu1 }
 0x597   : > { %v1529_v24 = vadd.f32 %v1901_v22, %v1379_v27  ;;  %v1520_v44 = vpop.f32.mrb[33].mxu1 }
 0x598   : > { %v1521_v51 = vadd.f32 %v1520_v44, %v1369_v11  ;;  %v1902_v25 = vpop.f32.mrb[34].mxu1 }
 0x599   : > { %v1561_v38 = vadd.f32 %v1994_v26, %v1529_v24  ;;  %v1532_v29 = vadd.f32 %v1902_v25, %v1384_v16  ;;  %v1523_v30 = vpop.f32.mrb[35].mxu1 }
 0x59a   : > { %v1559_v33 = vadd.f32 %v1995_v32, %v1521_v51  ;;  %v1524_v2 = vadd.f32 %v1523_v30, %v1374_v63 }
 0x59b   : > { %1577 = vst.msk [vmem:[%s2480_s29 + $0x50] sm:$0xff] %vm1060_vm0, %v1561_v38  ;;  %v1562_v34 = vadd.f32 %v1996_v0, %v1532_v29 }
 0x59c   : > { %1575 = vst.msk [vmem:[%s2480_s29 + $0x40] sm:$0xff] %vm1060_vm0, %v1559_v33  ;;  %v1560_v36 = vadd.f32 %v1997_v35, %v1524_v2 }
 0x59d   : > { %1578 = vst.msk [vmem:[%s2480_s29 + $0x58] sm:$0xff] %vm1060_vm0, %v1562_v34 }
 0x59e   : > { %1576 = vst.msk [vmem:[%s2480_s29 + $0x48] sm:$0xff] %vm1060_vm0, %v1560_v36  ;;  %v1905_v39 = vpop.f32.mrb[36].mxu1 }
 0x59f   : > { %v1545_v40 = vadd.f32 %v1905_v39, %v1399_v37  ;;  %v1536_v41 = vpop.f32.mrb[37].mxu1 }
 0x5a0   : > { %v1537_v59 = vadd.f32 %v1536_v41, %v1389_v46  ;;  %v1906_v53 = vpop.f32.mrb[38].mxu1 }
 0x5a1   : > { %v1565_v45 = vadd.f32 %v1998_v43, %v1545_v40  ;;  %v1548_v62 = vadd.f32 %v1906_v53, %v1404_v42  ;;  %v1539_v1 = vpop.f32.mrb[39].mxu1 }
 0x5a2   : > { %v1563_v48 = vadd.f32 %v1999_v47, %v1537_v59  ;;  %v1540_v49 = vadd.f32 %v1539_v1, %v1394_v31 }
 0x5a3   : > { %1581 = vst.msk [vmem:[%s2480_s29 + $0x70] sm:$0xff] %vm1060_vm0, %v1565_v45  ;;  %v1566_v50 = vadd.f32 %v2000_v56, %v1548_v62 }
 0x5a4   : > { %1579 = vst.msk [vmem:[%s2480_s29 + $0x60] sm:$0xff] %vm1060_vm0, %v1563_v48  ;;  %v1564_v6 = vadd.f32 %v2001_v55, %v1540_v49 }
 0x5a5   : > { %1582 = vst.msk [vmem:[%s2480_s29 + $0x78] sm:$0xff] %vm1060_vm0, %v1566_v50 }
 0x5a6   : > { %1580 = vst.msk [vmem:[%s2480_s29 + $0x68] sm:$0xff] %vm1060_vm0, %v1564_v6 }
 0x5a7 PF: > { %s15_s18 = sadd.s32 1, %s2008_s18  }
 0x5a8   : > { %p12_p4 = scmp.ge.s32.totalorder %s15_s18, 4  }
 0x5aa   :  { %14 = sbr.rel (!%p12_p4) target bundleno = 1 (0x1), region = 70 }

</bundles_post_ra>
